<compile_context>
chip_gen: v7x
topology: tpu7x:2x2x1
jax: 0.10.0
libtpu: 0.0.40
codegen_flags: <defaults>
</compile_context>

<pallas_src>
import functools

import jax
import jax.numpy as jnp
from jax import lax
from jax.experimental import pallas as pl
from jax.experimental.pallas import tpu as pltpu

_LANE = 128
_SUBLANE = 8

# Standalone RHS path: only worth a kernel launch for very large states.
_PALLAS_MIN_N = 128 * 1024          # elements per component
_RHS_TILE_M = 2048                  # 3 MiB/block; ~12 MiB double-buffered in+out

# Fused Euler rollout.
_EULER_MIN_N = 8 * _LANE
_EULER_TILE_M = 512                 # VMEM staging tile (per-review: own size)
_EULER_CHUNK = 128                  # 3 x 128 x 128 f32 ~= 48 vregs (fits 64)


# ----------------------------------------------------------------------------
# Math (references + shared step formulation)
# ----------------------------------------------------------------------------
def _rhs(x, y, z, sigma, beta, rho):
    return (sigma * (y - x),
            x * (rho - z) - y,
            x * y - beta * z)


def lorenz63_reference(state, *, sigma, beta, rho):
    """Pure-JAX reference mirroring the PyTorch forward."""
    fx, fy, fz = _rhs(state[0], state[1], state[2], sigma, beta, rho)
    return jnp.stack([fx, fy, fz], axis=0)


def euler_rollout_reference(state, *, sigma, beta, rho, dt, n_steps):
    """Literal `s + dt * f(s)` rollout (matches the PyTorch-style expression)."""
    def step(s, _):
        f = lorenz63_reference(s, sigma=sigma, beta=beta, rho=rho)
        return s + dt * f, None
    s, _ = lax.scan(step, state, None, length=n_steps)
    return s


def _folded_coeffs(sigma, beta, rho, dt):
    """Strength-reduced Euler coefficients (dt folded into scalars)."""
    dt, sigma, beta, rho = float(dt), float(sigma), float(beta), float(rho)
    return (1.0 - dt * sigma,   # cxx
            dt * sigma,         # cxy
            1.0 - dt,           # cyy
            dt * rho,           # dt_rho
            dt,                 # dt
            1.0 - dt * beta)    # czz


def _euler_step_folded(x, y, z, coeffs):
    cxx, cxy, cyy, dt_rho, dt, czz = coeffs
    #   x' = (1 - dt*sigma) x + (dt*sigma) y
    #   y' = (1 - dt)       y + x (dt*rho - dt*z)
    #   z' = (1 - dt*beta)  z + dt*(x*y)
    return (cxx * x + cxy * y,
            cyy * y + x * (dt_rho - dt * z),
            czz * z + dt * (x * y))


def euler_rollout_reference_folded(state, *, sigma, beta, rho, dt, n_steps):
    """Pure-JAX rollout using the SAME strength-reduced step as the kernel."""
    coeffs = _folded_coeffs(sigma, beta, rho, dt)
    def step(s, _):
        x, y, z = _euler_step_folded(s[0], s[1], s[2], coeffs)
        return jnp.stack([x, y, z], axis=0), None
    s, _ = lax.scan(step, state, None, length=n_steps)
    return s


def observe(u):
    # Identity observation operator, as in the PyTorch module.
    return u


# ----------------------------------------------------------------------------
# Layout / tiling helpers
# ----------------------------------------------------------------------------
def _round_up(x, m):
    return (x + m - 1) // m * m


def _plan(n, max_tile):
    """Choose (tile_m, m_pad) for n elements per component.

    tile_m is a multiple of 8 and divides m_pad exactly (no ragged last block
    -> every store is a full-width unmasked vst).  When there is enough work,
    at least 2 tiles are produced so "parallel" can shard across v7x's 2 TCs.
    """
    m = _round_up(max(n, 1), _LANE) // _LANE       # 128-lane rows required
    m8 = _round_up(m, _SUBLANE)
    tile = min(max_tile, m8)
    if m8 >= 2 * _SUBLANE:                          # enough work to split in 2
        half = (m8 + 1) // 2
        tile = min(tile, _round_up(half, _SUBLANE))
    tile = max(tile, _SUBLANE)
    m_pad = _round_up(m8, tile)                     # exact multiple of tile
    return tile, m_pad


def _flatten(state):
    orig_shape = state.shape
    assert orig_shape[0] == 3, "Lorenz63 state must have leading dim 3 (x, y, z)"
    state2d = state.reshape(3, -1) if state.ndim > 1 else state.reshape(3, 1)
    return state2d, state2d.shape[1], orig_shape


def _to_slab(state2d, m_pad):
    """(3, N) -> zero-padded lane/sublane-dense (3, m_pad, 128)."""
    n = state2d.shape[1]
    pad = m_pad * _LANE - n
    if pad:
        state2d = jnp.pad(state2d, ((0, 0), (0, pad)))
    return state2d.reshape(3, m_pad, _LANE)


def _from_slab(slab, n, orig_shape):
    return slab.reshape(3, -1)[:, :n].reshape(orig_shape)


# ----------------------------------------------------------------------------
# Kernels
# ----------------------------------------------------------------------------
def _lorenz63_rhs_kernel(state_ref, f_ref, *, sigma, beta, rho):
    # Each component is a full (tile_m, 128) slab: unmasked vector loads/stores.
    fx, fy, fz = _rhs(state_ref[0], state_ref[1], state_ref[2], sigma, beta, rho)
    f_ref[0] = fx
    f_ref[1] = fy
    f_ref[2] = fz


def _lorenz63_euler_kernel(state_ref, out_ref, *, coeffs, n_steps, tile_m):
    # Time loop innermost over a vreg-resident chunk: one VMEM load and one
    # store per chunk for ALL n_steps (no per-step VMEM round trip).
    unroll = n_steps if n_steps <= 16 else 8

    def step(_, carry):
        x, y, z = carry
        return _euler_step_folded(x, y, z, coeffs)

    for off in range(0, tile_m, _EULER_CHUNK):           # static chunk loop
        rows = min(_EULER_CHUNK, tile_m - off)
        sl = slice(off, off + rows)
        x = state_ref[0, sl, :]
        y = state_ref[1, sl, :]
        z = state_ref[2, sl, :]
        x, y, z = lax.fori_loop(0, n_steps, step, (x, y, z), unroll=unroll)
        out_ref[0, sl, :] = x
        out_ref[1, sl, :] = y
        out_ref[2, sl, :] = z


def _run_tiled(kernel, slab, tile_m, *, alias_in_out=False):
    """Run `kernel` over a (3, m_pad, 128) slab with an exact, parallel 1-D grid."""
    m_pad = slab.shape[1]
    assert m_pad % tile_m == 0, "slab must be padded to an exact multiple of tile_m"
    grid = (m_pad // tile_m,)
    return pl.pallas_call(
        kernel,
        out_shape=jax.ShapeDtypeStruct(slab.shape, slab.dtype),
        grid=grid,
        in_specs=[pl.BlockSpec((3, tile_m, _LANE), lambda i: (0, i, 0))],
        out_specs=pl.BlockSpec((3, tile_m, _LANE), lambda i: (0, i, 0)),
        input_output_aliases={0: 0} if alias_in_out else {},
        compiler_params=pltpu.CompilerParams(
            dimension_semantics=("parallel",)),
    )(slab)


# ----------------------------------------------------------------------------
# Public wrappers
# ----------------------------------------------------------------------------
def lorenz63_forward(t, state, *, sigma, beta, rho, force_pallas=False):
    """Pallas implementation of Lorenz63.forward.

    `t` is unused (signature parity with the PyTorch module).  `state` may be
    (3,) or (3, ...); trailing dims are flattened into the lane axis.
    """
    del t  # unused, as in the reference module
    state2d, n, orig_shape = _flatten(state)

    if n < _PALLAS_MIN_N and not force_pallas:
        # Mem-bound elementwise op: XLA fusion is already at the HBM roofline.
        return lorenz63_reference(state, sigma=sigma, beta=beta, rho=rho)

    tile_m, m_pad = _plan(n, _RHS_TILE_M)
    kernel = functools.partial(
        _lorenz63_rhs_kernel,
        sigma=float(sigma), beta=float(beta), rho=float(rho))
    f_slab = _run_tiled(kernel, _to_slab(state2d, m_pad), tile_m)
    return _from_slab(f_slab, n, orig_shape)


def lorenz63_euler_rollout(state, *, sigma, beta, rho, dt, n_steps,
                           force_pallas=False):
    """Fused in-kernel Euler integration of the Lorenz63 system (n_steps steps)."""
    state2d, n, orig_shape = _flatten(state)

    if (n < _EULER_MIN_N and not force_pallas) or int(n_steps) <= 0:
        return euler_rollout_reference(
            state, sigma=sigma, beta=beta, rho=rho, dt=dt, n_steps=n_steps)

    tile_m, m_pad = _plan(n, _EULER_TILE_M)
    kernel = functools.partial(
        _lorenz63_euler_kernel,
        coeffs=_folded_coeffs(sigma, beta, rho, dt),
        n_steps=int(n_steps), tile_m=tile_m)
    out_slab = _run_tiled(kernel, _to_slab(state2d, m_pad), tile_m,
                          alias_in_out=True)
    return _from_slab(out_slab, n, orig_shape)


class Lorenz63:
    """Thin parity wrapper matching the PyTorch module's interface."""

    def __init__(self, *args):
        self.sigma, self.beta, self.rho = args[0], args[1], args[2]

    def forward(self, t, state):
        return lorenz63_forward(t, state, sigma=self.sigma, beta=self.beta,
                                rho=self.rho)

    __call__ = forward

    def observe(self, u):
        return u


# ----------------------------------------------------------------------------
# Demo / correctness check
# ----------------------------------------------------------------------------
if __name__ == "__main__":
    # Canonical Lorenz-63 parameters.
    sigma, beta, rho = 10.0, 8.0 / 3.0, 28.0
    t = jnp.float32(0.0)  # unused by the dynamics

    # Ensemble already in lane/sublane-dense layout: (3, 512, 128) = 65536
    # members.  Large enough to exercise multi-tile grids and the in-kernel
    # 128-row chunk loop, still < 1 MiB total.
    key = jax.random.PRNGKey(0)
    state = jax.random.normal(key, (3, 512, 128), dtype=jnp.float32) * 5.0

    # --- RHS kernel (forced onto the Pallas path; by default this size routes
    #     to XLA's elementwise fusion, per the perf review) ---
    f = lorenz63_forward(t, state, sigma=sigma, beta=beta, rho=rho,
                         force_pallas=True)
    f = jax.block_until_ready(f)
    f_ref = lorenz63_reference(state, sigma=sigma, beta=beta, rho=rho)
    assert f.shape == state.shape
    assert jnp.allclose(f, f_ref, rtol=1e-6, atol=1e-6), "RHS mismatch vs reference"

    # --- Module-style wrapper + tiny-state path (pure-JAX fusion) ---
    model = Lorenz63(sigma, beta, rho)
    small = jax.random.normal(jax.random.PRNGKey(1), (3,), dtype=jnp.float32)
    f_small = model(t, small)
    f_small_ref = lorenz63_reference(small, sigma=sigma, beta=beta, rho=rho)
    assert f_small.shape == small.shape
    assert jnp.allclose(f_small, f_small_ref, rtol=1e-6, atol=1e-6)

    # --- Fused Euler integrator kernel ---
    dt, n_steps = 0.005, 16
    rolled_ref = euler_rollout_reference(
        state, sigma=sigma, beta=beta, rho=rho, dt=dt, n_steps=n_steps)
    rolled_ref_folded = euler_rollout_reference_folded(
        state, sigma=sigma, beta=beta, rho=rho, dt=dt, n_steps=n_steps)

    rolled = lorenz63_euler_rollout(
        state, sigma=sigma, beta=beta, rho=rho, dt=dt, n_steps=n_steps)
    rolled = jax.block_until_ready(rolled)
    assert rolled.shape == state.shape
    # Tight check against the identically-formulated (strength-reduced) reference.
    assert jnp.allclose(rolled, rolled_ref_folded, rtol=1e-4, atol=1e-3), \
        "Euler rollout mismatch vs folded reference"
    # Looser check against the literal `s + dt * f(s)` expression (rounding of
    # the folded coefficients differs slightly; chaotic map amplifies ULPs).
    assert jnp.allclose(rolled, rolled_ref, rtol=5e-3, atol=5e-3), \
        "Euler rollout mismatch vs literal reference"

    # observe() is identity — trivially checked.
    assert jnp.array_equal(observe(f), f)
    assert jnp.array_equal(model.observe(f), f)

    print("KERNEL_OK")
</pallas_src>

<mosaic_0001>
module attributes {stable_mosaic.version = 11 : i64} {
  func.func @_lorenz63_rhs_kernel(%arg0: i32, %arg1: memref<3x256x128xf32, #tpu.memory_space<vmem>>, %arg2: memref<3x256x128xf32, #tpu.memory_space<vmem>>) attributes {dimension_semantics = [#tpu.dimension_semantics<parallel>], iteration_bounds = array<i64: 2>, scalar_prefetch = 0 : i64, scratch_operands = 0 : i64, tpu.core_type = #tpu.core_type<tc>, window_params = [{transform_indices = @transform_0, window_bounds = array<i64: 3, 256, 128>}, {transform_indices = @transform_1, window_bounds = array<i64: 3, 256, 128>}]} {
    %c0 = arith.constant 0 : index
    %c0_0 = arith.constant 0 : index
    %c0_1 = arith.constant 0 : index
    %0 = vector.load %arg1[%c0, %c0_0, %c0_1] : memref<3x256x128xf32, #tpu.memory_space<vmem>>, vector<1x256x128xf32>
    %1 = vector.shape_cast %0 : vector<1x256x128xf32> to vector<256x128xf32>
    %c1 = arith.constant 1 : index
    %c0_2 = arith.constant 0 : index
    %c0_3 = arith.constant 0 : index
    %2 = vector.load %arg1[%c1, %c0_2, %c0_3] : memref<3x256x128xf32, #tpu.memory_space<vmem>>, vector<1x256x128xf32>
    %3 = vector.shape_cast %2 : vector<1x256x128xf32> to vector<256x128xf32>
    %c2 = arith.constant 2 : index
    %c0_4 = arith.constant 0 : index
    %c0_5 = arith.constant 0 : index
    %4 = vector.load %arg1[%c2, %c0_4, %c0_5] : memref<3x256x128xf32, #tpu.memory_space<vmem>>, vector<1x256x128xf32>
    %5 = vector.shape_cast %4 : vector<1x256x128xf32> to vector<256x128xf32>
    %6 = arith.subf %3, %1 : vector<256x128xf32>
    %cst = arith.constant 1.000000e+01 : f32
    %7 = vector.broadcast %cst : f32 to vector<256x128xf32>
    %8 = arith.mulf %7, %6 : vector<256x128xf32>
    %cst_6 = arith.constant 2.800000e+01 : f32
    %9 = vector.broadcast %cst_6 : f32 to vector<256x128xf32>
    %10 = arith.subf %9, %5 : vector<256x128xf32>
    %11 = arith.mulf %1, %10 : vector<256x128xf32>
    %12 = arith.subf %11, %3 : vector<256x128xf32>
    %13 = arith.mulf %1, %3 : vector<256x128xf32>
    %cst_7 = arith.constant 2.66666675 : f32
    %14 = vector.broadcast %cst_7 : f32 to vector<256x128xf32>
    %15 = arith.mulf %14, %5 : vector<256x128xf32>
    %16 = arith.subf %13, %15 : vector<256x128xf32>
    %c0_8 = arith.constant 0 : index
    %c0_9 = arith.constant 0 : index
    %c0_10 = arith.constant 0 : index
    %17 = vector.load %arg2[%c0_8, %c0_9, %c0_10] : memref<3x256x128xf32, #tpu.memory_space<vmem>>, vector<1x256x128xf32>
    %18 = vector.shape_cast %17 : vector<1x256x128xf32> to vector<256x128xf32>
    %19 = vector.shape_cast %8 : vector<256x128xf32> to vector<1x256x128xf32>
    tpu.vector_store %arg2[%c0_8, %c0_9, %c0_10], %19 {strides = array<i32>} : memref<3x256x128xf32, #tpu.memory_space<vmem>>, vector<1x256x128xf32>,
    %c1_11 = arith.constant 1 : index
    %c0_12 = arith.constant 0 : index
    %c0_13 = arith.constant 0 : index
    %20 = vector.load %arg2[%c1_11, %c0_12, %c0_13] : memref<3x256x128xf32, #tpu.memory_space<vmem>>, vector<1x256x128xf32>
    %21 = vector.shape_cast %20 : vector<1x256x128xf32> to vector<256x128xf32>
    %22 = vector.shape_cast %12 : vector<256x128xf32> to vector<1x256x128xf32>
    tpu.vector_store %arg2[%c1_11, %c0_12, %c0_13], %22 {strides = array<i32>} : memref<3x256x128xf32, #tpu.memory_space<vmem>>, vector<1x256x128xf32>,
    %c2_14 = arith.constant 2 : index
    %c0_15 = arith.constant 0 : index
    %c0_16 = arith.constant 0 : index
    %23 = vector.load %arg2[%c2_14, %c0_15, %c0_16] : memref<3x256x128xf32, #tpu.memory_space<vmem>>, vector<1x256x128xf32>
    %24 = vector.shape_cast %23 : vector<1x256x128xf32> to vector<256x128xf32>
    %25 = vector.shape_cast %16 : vector<256x128xf32> to vector<1x256x128xf32>
    tpu.vector_store %arg2[%c2_14, %c0_15, %c0_16], %25 {strides = array<i32>} : memref<3x256x128xf32, #tpu.memory_space<vmem>>, vector<1x256x128xf32>,
    return
  }
  func.func @transform_0(%arg0: i32) -> (i32, i32, i32) {
    %c0_i32 = arith.constant 0 : i32
    %c0_i32_0 = arith.constant 0 : i32
    %c0_i32_1 = arith.constant 0 : i32
    return %c0_i32, %arg0, %c0_i32_0 : i32, i32, i32
  }
  func.func @transform_1(%arg0: i32) -> (i32, i32, i32) {
    %c0_i32 = arith.constant 0 : i32
    %c0_i32_0 = arith.constant 0 : i32
    %c0_i32_1 = arith.constant 0 : i32
    return %c0_i32, %arg0, %c0_i32_0 : i32, i32, i32
  }
}

</mosaic_0001>

<bundles_post_ra>
// kernel: tpu_custom_call.1
= control target key start
LH: loop header
LB: loop body
LE: loop exit
PB: predicated region body
PF: predicated region fallthrough
CT: control target
= control target key end

     0   :  { %6 = vsyncpa [#allocation3], 0  ;;  %s1847_s0 = inlined_call_operand.hbm [shape: f32[3,512,128], index: 0, kind: input, shape index: {}]   ;;  %s1848_s1 = inlined_call_operand.hbm [shape: f32[3,512,128], index: 1, kind: output, shape index: {}]  }
   0x1   :  { %8 = vsyncpa [#allocation3 + $0x1], 0 }
   0x2   :  { %9 = vsyncpa [#allocation4], 0 }
   0x3   :  { %11 = vsyncpa [#allocation4 + $0x1], 0  ;;  %s1004_s6 = smov 0   ;;  %s1006_s7 = smov 0  }
   0x4   :  { %s1008_s8 = smov 0   ;;  %s1010_s9 = smov 0  }
   0x5 LB: > { %s1025_s10 = sadd.s32 4294967295, %s979_s9   ;;  %s730_s11 = sadd.s32 4294967294, %s979_s9   ;;  %s979_s9 = sphi %s1010_s9, %s1991_s9   ;;  %s975_s8 = sphi %s1008_s8, %s1990_s8   ;;  %s971_s7 = sphi %s1006_s7, %s1989_s7   ;;  %s967_s6 = sphi %s1004_s6, %s1988_s6  }
   0x6   : > { %s1029_s12 = sadd.s32 1, %s979_s9   ;;  %s24_s13 = sadd.s32 1, %s975_s8 }
   0x7   : > { %s21_s14 = ssub.s32 %s979_s9, %s1029_s12  ;;  %p31_p0 = scmp.ne.s32.totalorder %s975_s8, %s971_s7 }
   0x8   : > { %p22_p1 = scmp.eq.s32.totalorder %s21_s14, 0  ;;  %p32_p2 = scmp.eq.s32.totalorder %s979_s9, 0 }
   0x9   : > { %p37_p3 = scmp.ne.s32.totalorder %s971_s7, %s967_s6  ;;  %p38_p4 = scmp.eq.s32.totalorder %s1025_s10, 0 }
   0xa   : > { %s1041_s15 = scalar_select %p22_p1, %s975_s8, %s24_s13  }
   0xb   : > { %p1043_p5 = por %p32_p2, %p31_p0  ;;  %p1047_p6 = por %p38_p4, %p37_p3 }
   0xc   : > { %p61_p7 = scmp.eq.s32.totalorder %s1025_s10, 1  ;;  %p67_p8 = scmp.eq.s32.totalorder %s730_s11, 1 }
   0xd   : > { %p732_p11 = scmp.ge.s32.totalorder %s979_s9, 2 }
   0xe   : > { %p1052_p9 = por %p61_p7, %p31_p0  ;;  %p1056_p10 = por %p67_p8, %p37_p3 }
   0xf   : > { %83 = sbr.rel (%p732_p11) target bundleno = 36 (0x24), region = 16 }
  0x16   : > { %s87_s20 = sand.u32 1, %s975_s8   ;;  %s870_s22 = sshll.u32 %s979_s9, 12 }
  0x17   : > { %s872_s21 = smul.u32 768, %s87_s20  ;;  %s981_s23 = smov 8192  }
  0x18   : > { %875 = sst [smem:[#allocation7]] (%p1043_p5), %s981_s23  ;;  %s97_s27 = scalar_lea.hbm %s1847_s0, %s870_s22 }
  0x19   : > { %s874_s24 = scalar_select %p1043_p5, [#allocation0], [#allocation10] }
  0x1a   : > { %s91_s29 = scalar_lea.vmem [#allocation2], %s872_s21  ;;  %s982_s2 = smov 4096  }
  0x1b   : > { %s102_s28 = sld [smem:[%s874_s24]]   ;;  %s110_s30 = sshll.u32 %s91_s29, 4  ;;  %s111_s30 = int_to_ptr.vmem [resolvable:$true] %s110_s30 }
  0x1c   : > { %876 = sst [smem:[#allocation7 + $0x1]] (%p1043_p5), %s982_s2  ;;  %s983_s3 = smov 32  }
  0x1d   : > { %877 = sst [smem:[#allocation7 + $0x2]] (%p1043_p5), %s983_s3  ;;  %s984_s4 = smov 128  }
  0x1e   : > { %878 = sst [smem:[#allocation7 + $0x3]] (%p1043_p5), %s984_s4  ;;  %s985_s5 = smov 8  }
  0x1f   : > { %879 = sst [smem:[#allocation7 + $0x4]] (%p1043_p5), %s984_s4  ;;  %s88_s14 = scalar_lea.sflag [#allocation3], %s87_s20 }
  0x20   : > { %880 = sst [smem:[#allocation7 + $0x5]] (%p1043_p5), %s985_s5  ;;  %s986_s21 = smov [#allocation6]  }
  0x21   : > { %s735_s11 = sshll.u32 %s102_s28, 26 }
  0x22   : > { %s736_s13 = sadd.s32 134217728, %s735_s11 }
  0x23   : > { %881 = dma.general (%p1043_p5), %s97_s27, 12288, %s111_s30, %s88_s14, %s986_s21, [#allocation7], %s736_s13, 0  }
  0x24 PF: > { %p737_p12 = scmp.ge.s32.totalorder %s979_s9, 1  ;;  %p131_p13 = scmp.lt.s32.totalorder %s979_s9, 3 }
  0x26   : > { %p132_p0 = pnand %p737_p12, %p131_p13 }
  0x28   : > { %135 = sbr.rel (%p132_p0) target bundleno = 148 (0x94), region = 24 }
  0x2f   : > { %s1087_s22 = sand.u32 1, %s971_s7  }
  0x30   : > { %s873_s23 = smul.u32 768, %s1087_s22  ;;  %s138_s24 = scalar_lea.sflag [#allocation3], %s1087_s22 }
  0x32   : > { %s1093_s20 = scalar_lea.vmem [#allocation2], %s873_s23 }
  0x33   : > { %958 = dma.done.wait (%p1047_p6), %s138_s24, 12288  }
  0x34   : > { %960 = vsyncadd (%p1047_p6), %s138_s24, 4294955008  ;;  %v1100_v0 = vld [vmem:[%s1093_s20] sm:$0xff]  ;;  %v1106_v2 = vld [vmem:[%s1093_s20 + $0x8] sm:$0xff]  ;;  %s1174_s16 = scalar_lea.vmem [#allocation5], %s873_s23  ;;  %s615_s17 = scalar_lea.sflag [#allocation4], %s1087_s22 }
  0x35   : > { %v1103_v1 = vld [vmem:[%s1093_s20 + $0x100] sm:$0xff]  ;;  %v1111_v4 = vld [vmem:[%s1093_s20 + $0x108] sm:$0xff]  ;;  %v1114_v5 = vld [vmem:[%s1093_s20 + $0x10] sm:$0xff] }
  0x36   : > { %v260_v3 = vsub.f32 %v1103_v1, %v1100_v0  ;;  %v1117_v6 = vld [vmem:[%s1093_s20 + $0x110] sm:$0xff]  ;;  %v261_v7 = vsub.f32 %v1111_v4, %v1106_v2  ;;  %v1124_v9 = vld [vmem:[%s1093_s20 + $0x18] sm:$0xff]  ;;  %v1130_v11 = vld [vmem:[%s1093_s20 + $0x20] sm:$0xff]  ;;  %v1134_v12 = vmul.f32 %v1103_v1, %v1100_v0  ;;  %v1138_v13 = vmul.f32 %v1111_v4, %v1106_v2 }
  0x37   : > { %v262_v8 = vsub.f32 %v1117_v6, %v1114_v5  ;;  %v1127_v10 = vld [vmem:[%s1093_s20 + $0x118] sm:$0xff]  ;;  %v1143_v16 = vld [vmem:[%s1093_s20 + $0x120] sm:$0xff]  ;;  %v1146_v17 = vld [vmem:[%s1093_s20 + $0x28] sm:$0xff]  ;;  %v1153_v19 = vmul.f32 %v1117_v6, %v1114_v5 }
  0x38   : > { %1895 = vst [vmem:[#allocation13_spill] sm:$0xff] %v1134_v12  ;;  %1896 = vst [vmem:[#allocation14_spill] sm:$0xff] %v1138_v13  ;;  %v292_v14 = vmul.f32 10.0, %v260_v3  ;;  %v263_v15 = vsub.f32 %v1127_v10, %v1124_v9  ;;  %v1149_v18 = vld [vmem:[%s1093_s20 + $0x128] sm:$0xff]  ;;  %v1157_v20 = vmul.f32 %v1127_v10, %v1124_v9  ;;  %v293_v21 = vmul.f32 10.0, %v261_v7  ;;  %v1164_v25 = vld [vmem:[%s1093_s20 + $0x30] sm:$0xff] }
  0x39   : > { %1897 = vst [vmem:[#allocation15_spill] sm:$0xff] %v1153_v19  ;;  %v294_v22 = vmul.f32 10.0, %v262_v8  ;;  %v264_v23 = vsub.f32 %v1143_v16, %v1130_v11  ;;  %v265_v24 = vsub.f32 %v1149_v18, %v1146_v17  ;;  %v1167_v26 = vld [vmem:[%s1093_s20 + $0x130] sm:$0xff]  ;;  %v1170_v27 = vld [vmem:[%s1093_s20 + $0x38] sm:$0xff]  ;;  %v1183_v31 = vld [vmem:[%s1093_s20 + $0x40] sm:$0xff]  ;;  %v1190_v33 = vmul.f32 %v1143_v16, %v1130_v11 }
  0x3a   : > { %1898 = vst [vmem:[#allocation16_spill] sm:$0xff] %v1157_v20  ;;  %516 = vst [vmem:[%s1174_s16] sm:$0xff] %v292_v14  ;;  %v295_v28 = vmul.f32 10.0, %v263_v15  ;;  %v266_v29 = vsub.f32 %v1167_v26, %v1164_v25  ;;  %v1180_v30 = vld [vmem:[%s1093_s20 + $0x138] sm:$0xff]  ;;  %v1186_v32 = vld [vmem:[%s1093_s20 + $0x140] sm:$0xff]  ;;  %v1194_v34 = vmul.f32 %v1149_v18, %v1146_v17  ;;  %v1225_v47 = vmul.f32 %v1167_v26, %v1164_v25 }
  0x3b   : > { %1899 = vst [vmem:[#allocation17_spill] sm:$0xff] %v1190_v33  ;;  %517 = vst [vmem:[%s1174_s16 + $0x8] sm:$0xff] %v293_v21  ;;  %v296_v35 = vmul.f32 10.0, %v264_v23  ;;  %v297_v36 = vmul.f32 10.0, %v265_v24  ;;  %v267_v37 = vsub.f32 %v1180_v30, %v1170_v27  ;;  %v268_v38 = vsub.f32 %v1186_v32, %v1183_v31  ;;  %v1203_v39 = vld [vmem:[%s1093_s20 + $0x48] sm:$0xff]  ;;  %v1209_v41 = vld [vmem:[%s1093_s20 + $0x50] sm:$0xff] }
  0x3c   : > { %1900 = vst [vmem:[#allocation18_spill] sm:$0xff] %v1194_v34  ;;  %518 = vst [vmem:[%s1174_s16 + $0x10] sm:$0xff] %v294_v22  ;;  %v1206_v40 = vld [vmem:[%s1093_s20 + $0x148] sm:$0xff]  ;;  %v298_v42 = vmul.f32 10.0, %v266_v29  ;;  %v1215_v44 = vld [vmem:[%s1093_s20 + $0x150] sm:$0xff]  ;;  %v1229_v48 = vmul.f32 %v1180_v30, %v1170_v27  ;;  %v1260_v61 = vmul.f32 %v1186_v32, %v1183_v31 }
  0x3d   : > { %519 = vst [vmem:[%s1174_s16 + $0x18] sm:$0xff] %v295_v28  ;;  %v269_v43 = vsub.f32 %v1206_v40, %v1203_v39  ;;  %v1218_v45 = vld [vmem:[%s1093_s20 + $0x58] sm:$0xff]  ;;  %1901 = vst [vmem:[#allocation19_spill] sm:$0xff] %v1225_v47  ;;  %v299_v49 = vmul.f32 10.0, %v267_v37  ;;  %v300_v50 = vmul.f32 10.0, %v268_v38  ;;  %v270_v51 = vsub.f32 %v1215_v44, %v1209_v41  ;;  %v1238_v53 = vld [vmem:[%s1093_s20 + $0x60] sm:$0xff] }
  0x3e   : > { %v1221_v46 = vld [vmem:[%s1093_s20 + $0x158] sm:$0xff]  ;;  %1902 = vst [vmem:[#allocation20_spill] sm:$0xff] %v1229_v48  ;;  %520 = vst [vmem:[%s1174_s16 + $0x20] sm:$0xff] %v296_v35  ;;  %v1241_v54 = vld [vmem:[%s1093_s20 + $0x160] sm:$0xff]  ;;  %v1264_v62 = vmul.f32 %v1206_v40, %v1203_v39  ;;  %v1295_v35 = vmul.f32 %v1215_v44, %v1209_v41 }
  0x3f   : > { %521 = vst [vmem:[%s1174_s16 + $0x28] sm:$0xff] %v297_v36  ;;  %v271_v52 = vsub.f32 %v1221_v46, %v1218_v45  ;;  %v1244_v55 = vld [vmem:[%s1093_s20 + $0x68] sm:$0xff]  ;;  %522 = vst [vmem:[%s1174_s16 + $0x30] sm:$0xff] %v298_v42  ;;  %v301_v56 = vmul.f32 10.0, %v269_v43  ;;  %v272_v57 = vsub.f32 %v1241_v54, %v1238_v53  ;;  %v1253_v59 = vld [vmem:[%s1093_s20 + $0x70] sm:$0xff]  ;;  %v302_v63 = vmul.f32 10.0, %v270_v51 }
  0x40   : > { %v1250_v58 = vld [vmem:[%s1093_s20 + $0x168] sm:$0xff]  ;;  %v1256_v60 = vld [vmem:[%s1093_s20 + $0x170] sm:$0xff]  ;;  %1903 = vst [vmem:[#allocation21_spill] sm:$0xff] %v1260_v61  ;;  %1904 = vst [vmem:[#allocation22_spill] sm:$0xff] %v1264_v62  ;;  %v1299_v36 = vmul.f32 %v1221_v46, %v1218_v45 }
  0x41   : > { %523 = vst [vmem:[%s1174_s16 + $0x38] sm:$0xff] %v299_v49  ;;  %524 = vst [vmem:[%s1174_s16 + $0x40] sm:$0xff] %v300_v50  ;;  %v303_v3 = vmul.f32 10.0, %v271_v52  ;;  %v273_v7 = vsub.f32 %v1250_v58, %v1244_v55  ;;  %v274_v8 = vsub.f32 %v1256_v60, %v1253_v59  ;;  %v1273_v14 = vld [vmem:[%s1093_s20 + $0x78] sm:$0xff]  ;;  %v1279_v21 = vld [vmem:[%s1093_s20 + $0x80] sm:$0xff]  ;;  %v304_v22 = vmul.f32 10.0, %v272_v57 }
  0x42   : > { %v1276_v15 = vld [vmem:[%s1093_s20 + $0x178] sm:$0xff]  ;;  %525 = vst [vmem:[%s1174_s16 + $0x48] sm:$0xff] %v301_v56  ;;  %v1285_v24 = vld [vmem:[%s1093_s20 + $0x180] sm:$0xff]  ;;  %v1288_v28 = vld [vmem:[%s1093_s20 + $0x88] sm:$0xff]  ;;  %v1365_v48 = vmul.f32 %v1256_v60, %v1253_v59 }
  0x43   : > { %v275_v23 = vsub.f32 %v1276_v15, %v1273_v14  ;;  %v1291_v29 = vld [vmem:[%s1093_s20 + $0x188] sm:$0xff]  ;;  %1905 = vst [vmem:[#allocation23_spill] sm:$0xff] %v1295_v35  ;;  %1906 = vst [vmem:[#allocation24_spill] sm:$0xff] %v1299_v36  ;;  %v305_v37 = vmul.f32 10.0, %v273_v7  ;;  %v306_v38 = vmul.f32 10.0, %v274_v8  ;;  %v276_v42 = vsub.f32 %v1285_v24, %v1279_v21  ;;  %v1308_v49 = vld [vmem:[%s1093_s20 + $0x90] sm:$0xff] }
  0x44   : > { %526 = vst [vmem:[%s1174_s16 + $0x50] sm:$0xff] %v302_v63  ;;  %527 = vst [vmem:[%s1174_s16 + $0x58] sm:$0xff] %v303_v3  ;;  %v277_v43 = vsub.f32 %v1291_v29, %v1288_v28  ;;  %v1311_v50 = vld [vmem:[%s1093_s20 + $0x190] sm:$0xff]  ;;  %v1314_v51 = vld [vmem:[%s1093_s20 + $0x98] sm:$0xff]  ;;  %v1330_v7 = vmul.f32 %v1241_v54, %v1238_v53  ;;  %v1334_v8 = vmul.f32 %v1250_v58, %v1244_v55 }
  0x45   : > { %528 = vst [vmem:[%s1174_s16 + $0x60] sm:$0xff] %v304_v22  ;;  %v307_v52 = vmul.f32 10.0, %v275_v23  ;;  %v278_v56 = vsub.f32 %v1311_v50, %v1308_v49  ;;  %v1320_v57 = vld [vmem:[%s1093_s20 + $0x198] sm:$0xff]  ;;  %v1323_v63 = vld [vmem:[%s1093_s20 + $0xa0] sm:$0xff]  ;;  %529 = vst [vmem:[%s1174_s16 + $0x68] sm:$0xff] %v305_v37  ;;  %v308_v22 = vmul.f32 10.0, %v276_v42  ;;  %v1400_v13 = vmul.f32 %v1285_v24, %v1279_v21 }
  0x46   : > { %v1326_v3 = vld [vmem:[%s1093_s20 + $0x1a0] sm:$0xff]  ;;  %1907 = vst [vmem:[#allocation25_spill] sm:$0xff] %v1330_v7  ;;  %1908 = vst [vmem:[#allocation26_spill] sm:$0xff] %v1334_v8  ;;  %v309_v23 = vmul.f32 10.0, %v277_v43  ;;  %v279_v36 = vsub.f32 %v1320_v57, %v1314_v51  ;;  %v1343_v62 = vld [vmem:[%s1093_s20 + $0xa8] sm:$0xff] }
  0x47   : > { %530 = vst [vmem:[%s1174_s16 + $0x70] sm:$0xff] %v306_v38  ;;  %v280_v35 = vsub.f32 %v1326_v3, %v1323_v63  ;;  %v1346_v7 = vld [vmem:[%s1093_s20 + $0x1a8] sm:$0xff]  ;;  %v1349_v61 = vld [vmem:[%s1093_s20 + $0xb0] sm:$0xff]  ;;  %531 = vst [vmem:[%s1174_s16 + $0x78] sm:$0xff] %v307_v52  ;;  %v310_v37 = vmul.f32 10.0, %v278_v56  ;;  %v1369_v52 = vmul.f32 %v1276_v15, %v1273_v14 }
  0x48   : > { %v281_v38 = vsub.f32 %v1346_v7, %v1343_v62  ;;  %v1355_v42 = vld [vmem:[%s1093_s20 + $0x1b0] sm:$0xff]  ;;  %v1358_v43 = vld [vmem:[%s1093_s20 + $0xb8] sm:$0xff]  ;;  %1911 = vst [vmem:[#allocation29_spill] sm:$0xff] %v1365_v48  ;;  %532 = vst [vmem:[%s1174_s16 + $0x80] sm:$0xff] %v308_v22  ;;  %v311_v56 = vmul.f32 10.0, %v279_v36 }
  0x49   : > { %1909 = vst [vmem:[#allocation27_spill] sm:$0xff] %v1355_v42  ;;  %v1361_v8 = vld [vmem:[%s1093_s20 + $0x1b8] sm:$0xff]  ;;  %1912 = vst [vmem:[#allocation30_spill] sm:$0xff] %v1369_v52  ;;  %v312_v47 = vmul.f32 10.0, %v280_v35  ;;  %v282_v34 = vsub.f32 %v1355_v42, %v1349_v61  ;;  %v1378_v20 = vld [vmem:[%s1093_s20 + $0xc0] sm:$0xff] }
  0x4a   : > { %1910 = vst [vmem:[#allocation28_spill] sm:$0xff] %v1361_v8  ;;  %533 = vst [vmem:[%s1174_s16 + $0x88] sm:$0xff] %v309_v23  ;;  %v283_v33 = vsub.f32 %v1361_v8, %v1358_v43  ;;  %v1381_v48 = vld [vmem:[%s1093_s20 + $0x1c0] sm:$0xff]  ;;  %v1384_v19 = vld [vmem:[%s1093_s20 + $0xc8] sm:$0xff]  ;;  %v313_v22 = vmul.f32 10.0, %v281_v38 }
  0x4b   : > { %1913 = vst [vmem:[#allocation31_spill] sm:$0xff] %v1378_v20  ;;  %1914 = vst [vmem:[#allocation32_spill] sm:$0xff] %v1381_v48  ;;  %v284_v35 = vsub.f32 %v1381_v48, %v1378_v20  ;;  %v1390_v36 = vld [vmem:[%s1093_s20 + $0x1c8] sm:$0xff]  ;;  %v1393_v23 = vld [vmem:[%s1093_s20 + $0xd0] sm:$0xff]  ;;  %v314_v38 = vmul.f32 10.0, %v282_v34 }
  0x4c   : > { %1915 = vst [vmem:[#allocation33_spill] sm:$0xff] %v1384_v19  ;;  %534 = vst [vmem:[%s1174_s16 + $0x90] sm:$0xff] %v310_v37  ;;  %v1396_v52 = vld [vmem:[%s1093_s20 + $0x1d0] sm:$0xff]  ;;  %v1404_v37 = vmul.f32 %v1291_v29, %v1288_v28  ;;  %v315_v12 = vmul.f32 10.0, %v283_v33  ;;  %v285_v48 = vsub.f32 %v1390_v36, %v1384_v19  ;;  %v1413_v8 = vld [vmem:[%s1093_s20 + $0xd8] sm:$0xff] }
  0x4d   : > { %1916 = vst [vmem:[#allocation34_spill] sm:$0xff] %v1390_v36  ;;  %1917 = vst [vmem:[#allocation35_spill] sm:$0xff] %v1393_v23  ;;  %v286_v20 = vsub.f32 %v1396_v52, %v1393_v23  ;;  %v1419_v42 = vld [vmem:[%s1093_s20 + $0xe0] sm:$0xff]  ;;  %v1448_v23 = vld [vmem:[%s1093_s20 + $0xf0] sm:$0xff] }
  0x4e   : > { %1918 = vst [vmem:[#allocation36_spill] sm:$0xff] %v1396_v52  ;;  %1919 = vst [vmem:[#allocation37_spill] sm:$0xff] %v1400_v13  ;;  %v1416_v13 = vld [vmem:[%s1093_s20 + $0x1d8] sm:$0xff]  ;;  %v1425_v34 = vld [vmem:[%s1093_s20 + $0x1e0] sm:$0xff]  ;;  %v1435_v52 = vmul.f32 %v1311_v50, %v1308_v49 }
  0x4f   : > { %1920 = vst [vmem:[#allocation38_spill] sm:$0xff] %v1404_v37  ;;  %535 = vst [vmem:[%s1174_s16 + $0x98] sm:$0xff] %v311_v56  ;;  %v287_v33 = vsub.f32 %v1416_v13, %v1413_v8  ;;  %v1428_v56 = vld [vmem:[%s1093_s20 + $0xe8] sm:$0xff]  ;;  %v288_v36 = vsub.f32 %v1425_v34, %v1419_v42  ;;  %v1454_v19 = vld [vmem:[%s1093_s20 + $0xf8] sm:$0xff] }
  0x50   : > { %536 = vst [vmem:[%s1174_s16 + $0xa0] sm:$0xff] %v312_v47  ;;  %1921 = vst [vmem:[#allocation39_spill] sm:$0xff] %v1413_v8  ;;  %v316_v47 = vmul.f32 10.0, %v284_v35  ;;  %v1431_v37 = vld [vmem:[%s1093_s20 + $0x1e8] sm:$0xff]  ;;  %v317_v35 = vmul.f32 10.0, %v285_v48  ;;  %v1460_v48 = vld [vmem:[%s1093_s20 + $0x1f8] sm:$0xff] }
  0x51   : > { %1922 = vst [vmem:[#allocation40_spill] sm:$0xff] %v1416_v13  ;;  %1923 = vst [vmem:[#allocation41_spill] sm:$0xff] %v1419_v42  ;;  %v318_v13 = vmul.f32 10.0, %v286_v20  ;;  %v289_v8 = vsub.f32 %v1431_v37, %v1428_v56  ;;  %v1488_v42 = vld [vmem:[%s1093_s20 + $0x220] sm:$0xff] }
  0x52   : > { %537 = vst [vmem:[%s1174_s16 + $0xa8] sm:$0xff] %v313_v22  ;;  %1924 = vst [vmem:[#allocation42_spill] sm:$0xff] %v1425_v34  ;;  %v1439_v22 = vmul.f32 %v1320_v57, %v1314_v51  ;;  %v291_v34 = vsub.f32 %v1460_v48, %v1454_v19 }
  0x53   : > { %1925 = vst [vmem:[#allocation43_spill] sm:$0xff] %v1428_v56  ;;  %1926 = vst [vmem:[#allocation44_spill] sm:$0xff] %v1431_v37  ;;  %v1470_v37 = vmul.f32 %v1326_v3, %v1323_v63  ;;  %v1482_v56 = vld [vmem:[%s1093_s20 + $0x210] sm:$0xff] }
  0x54   : > { %1927 = vst [vmem:[#allocation45_spill] sm:$0xff] %v1435_v52  ;;  %1928 = vst [vmem:[#allocation46_spill] sm:$0xff] %v1439_v22  ;;  %v1451_v52 = vld [vmem:[%s1093_s20 + $0x1f0] sm:$0xff]  ;;  %v1466_v22 = vld [vmem:[%s1093_s20 + $0x208] sm:$0xff] }
  0x55   : > { %538 = vst [vmem:[%s1174_s16 + $0xb0] sm:$0xff] %v314_v38  ;;  %539 = vst [vmem:[%s1174_s16 + $0xb8] sm:$0xff] %v315_v12  ;;  %v319_v12 = vmul.f32 10.0, %v287_v33  ;;  %v290_v20 = vsub.f32 %v1451_v52, %v1448_v23  ;;  %v1463_v38 = vld [vmem:[%s1093_s20 + $0x200] sm:$0xff]  ;;  %v320_v33 = vmul.f32 10.0, %v288_v36  ;;  %v326_v36 = vsub.f32 28.0, %v1482_v56 }
  0x56   : > { %1929 = vst [vmem:[#allocation47_spill] sm:$0xff] %v1448_v23  ;;  %1930 = vst [vmem:[#allocation48_spill] sm:$0xff] %v1451_v52  ;;  %v321_v52 = vmul.f32 10.0, %v289_v8  ;;  %v324_v23 = vsub.f32 28.0, %v1463_v38 }
  0x57   : > { %1931 = vst [vmem:[#allocation49_spill] sm:$0xff] %v1454_v19  ;;  %540 = vst [vmem:[%s1174_s16 + $0xc0] sm:$0xff] %v316_v47  ;;  %v1474_v47 = vmul.f32 %v1346_v7, %v1343_v62 }
  0x58   : > { %1932 = vst [vmem:[#allocation50_spill] sm:$0xff] %v1460_v48  ;;  %1933 = vst [vmem:[#allocation51_spill] sm:$0xff] %v1463_v38  ;;  %v1498_v48 = vld [vmem:[%s1093_s20 + $0x230] sm:$0xff]  ;;  %v323_v38 = vmul.f32 10.0, %v291_v34  ;;  %v356_v19 = vmul.f32 %v324_v23, %v1100_v0  ;;  %v1514_v0 = vld [vmem:[%s1093_s20 + $0x240] sm:$0xff] }
  0x59   : > { %1934 = vst [vmem:[#allocation52_spill] sm:$0xff] %v1466_v22  ;;  %1935 = vst [vmem:[#allocation53_spill] sm:$0xff] %v1470_v37  ;;  %v1485_v37 = vld [vmem:[%s1093_s20 + $0x218] sm:$0xff]  ;;  %v330_v34 = vsub.f32 28.0, %v1498_v48 }
  0x5a   : > { %1936 = vst [vmem:[#allocation54_spill] sm:$0xff] %v1474_v47  ;;  %541 = vst [vmem:[%s1174_s16 + $0xc8] sm:$0xff] %v317_v35  ;;  %v322_v35 = vmul.f32 10.0, %v290_v20  ;;  %v327_v8 = vsub.f32 28.0, %v1485_v37  ;;  %v1495_v47 = vld [vmem:[%s1093_s20 + $0x228] sm:$0xff]  ;;  %v388_v23 = vsub.f32 %v356_v19, %v1103_v1  ;;  %v1535_v19 = vld [vmem:[%s1093_s20 + $0x260] sm:$0xff] }
  0x5b   : > { %542 = vst [vmem:[%s1174_s16 + $0xd0] sm:$0xff] %v318_v13  ;;  %1937 = vst [vmem:[#allocation55_spill] sm:$0xff] %v1482_v56  ;;  %v325_v13 = vsub.f32 28.0, %v1466_v22  ;;  %v329_v20 = vsub.f32 28.0, %v1495_v47  ;;  %v1506_v56 = vld [vmem:[%s1093_s20 + $0x238] sm:$0xff]  ;;  %v358_v22 = vmul.f32 %v326_v36, %v1114_v5  ;;  %v1522_v5 = vld [vmem:[%s1093_s20 + $0x248] sm:$0xff] }
  0x5c   : > { %1938 = vst [vmem:[#allocation56_spill] sm:$0xff] %v1485_v37  ;;  %543 = vst [vmem:[%s1174_s16 + $0xd8] sm:$0xff] %v319_v12  ;;  %v328_v12 = vsub.f32 28.0, %v1488_v42  ;;  %v1538_v36 = vld [vmem:[%s1093_s20 + $0x268] sm:$0xff] }
  0x5d   : > { %544 = vst [vmem:[%s1174_s16 + $0xe0] sm:$0xff] %v320_v33  ;;  %545 = vst [vmem:[%s1174_s16 + $0xe8] sm:$0xff] %v321_v52  ;;  %v357_v37 = vmul.f32 %v325_v13, %v1106_v2  ;;  %v359_v52 = vmul.f32 %v327_v8, %v1124_v9  ;;  %v331_v2 = vsub.f32 28.0, %v1506_v56  ;;  %v1525_v9 = vld [vmem:[%s1093_s20 + $0x250] sm:$0xff]  ;;  %v1528_v13 = vld [vmem:[%s1093_s20 + $0x258] sm:$0xff]  ;;  %v390_v1 = vsub.f32 %v358_v22, %v1117_v6 }
  0x5e   : > { %546 = vst [vmem:[%s1174_s16 + $0xf0] sm:$0xff] %v322_v35  ;;  %547 = vst [vmem:[%s1174_s16 + $0xf8] sm:$0xff] %v323_v38  ;;  %v360_v33 = vmul.f32 %v328_v12, %v1130_v11  ;;  %v361_v35 = vmul.f32 %v329_v20, %v1146_v17  ;;  %v362_v17 = vmul.f32 %v330_v34, %v1164_v25  ;;  %v332_v6 = vsub.f32 28.0, %v1514_v0  ;;  %v1556_v22 = vld [vmem:[%s1093_s20 + $0x278] sm:$0xff] }
  0x5f   : > { %v389_v38 = vsub.f32 %v357_v37, %v1111_v4  ;;  %v391_v11 = vsub.f32 %v359_v52, %v1127_v10  ;;  %802 = vst [vmem:[%s1174_s16 + $0x100] sm:$0xff] %v388_v23  ;;  %v363_v4 = vmul.f32 %v331_v2, %v1170_v27  ;;  %v1546_v10 = vld [vmem:[%s1093_s20 + $0x270] sm:$0xff]  ;;  %804 = vst [vmem:[%s1174_s16 + $0x110] sm:$0xff] %v390_v1  ;;  %v333_v37 = vsub.f32 28.0, %v1522_v5  ;;  %v1584_v1 = vld [vmem:[%s1093_s20 + $0x298] sm:$0xff] }
  0x60   : > { %v392_v8 = vsub.f32 %v360_v33, %v1143_v16  ;;  %v393_v12 = vsub.f32 %v361_v35, %v1149_v18  ;;  %v394_v25 = vsub.f32 %v362_v17, %v1167_v26  ;;  %v334_v16 = vsub.f32 28.0, %v1525_v9  ;;  %v1591_v17 = vld [vmem:[%s1093_s20 + $0x2a0] sm:$0xff] }
  0x61   : > { %803 = vst [vmem:[%s1174_s16 + $0x108] sm:$0xff] %v389_v38  ;;  %805 = vst [vmem:[%s1174_s16 + $0x118] sm:$0xff] %v391_v11  ;;  %v335_v18 = vsub.f32 28.0, %v1528_v13  ;;  %v395_v27 = vsub.f32 %v363_v4, %v1180_v30  ;;  %v364_v20 = vmul.f32 %v332_v6, %v1183_v31  ;;  %v336_v26 = vsub.f32 28.0, %v1535_v19  ;;  %v1570_v30 = vld [vmem:[%s1093_s20 + $0x280] sm:$0xff] }
  0x62   : > { %806 = vst [vmem:[%s1174_s16 + $0x120] sm:$0xff] %v392_v8  ;;  %807 = vst [vmem:[%s1174_s16 + $0x128] sm:$0xff] %v393_v12  ;;  %v337_v52 = vsub.f32 28.0, %v1538_v36  ;;  %v365_v34 = vmul.f32 %v333_v37, %v1203_v39  ;;  %v366_v23 = vmul.f32 %v334_v16, %v1209_v41  ;;  %v338_v35 = vsub.f32 28.0, %v1546_v10  ;;  %v1578_v41 = vld [vmem:[%s1093_s20 + $0x288] sm:$0xff] }
  0x63   : > { %808 = vst [vmem:[%s1174_s16 + $0x130] sm:$0xff] %v394_v25  ;;  %v367_v33 = vmul.f32 %v335_v18, %v1218_v45  ;;  %809 = vst [vmem:[%s1174_s16 + $0x138] sm:$0xff] %v395_v27  ;;  %v396_v31 = vsub.f32 %v364_v20, %v1186_v32  ;;  %v368_v2 = vmul.f32 %v336_v26, %v1238_v53  ;;  %v339_v39 = vsub.f32 28.0, %v1556_v22  ;;  %v1581_v45 = vld [vmem:[%s1093_s20 + $0x290] sm:$0xff]  ;;  %v1594_v8 = vld [vmem:[%s1093_s20 + $0x2a8] sm:$0xff] }
  0x64   : > { %v369_v38 = vmul.f32 %v337_v52, %v1244_v55  ;;  %v397_v11 = vsub.f32 %v365_v34, %v1206_v40  ;;  %v398_v32 = vsub.f32 %v366_v23, %v1215_v44  ;;  %v370_v55 = vmul.f32 %v338_v35, %v1253_v59  ;;  %v1612_v25 = vld [vmem:[%s1093_s20 + $0x2b8] sm:$0xff]  ;;  %v1647_v35 = vld [vmem:[%s1093_s20 + $0x2e0] sm:$0xff] }
  0x65   : > { %v399_v53 = vsub.f32 %v367_v33, %v1221_v46  ;;  %810 = vst [vmem:[%s1174_s16 + $0x140] sm:$0xff] %v396_v31  ;;  %v400_v12 = vsub.f32 %v368_v2, %v1241_v54  ;;  %v371_v40 = vmul.f32 %v339_v39, %v1273_v14  ;;  %v340_v44 = vsub.f32 28.0, %v1570_v30  ;;  %v1602_v46 = vld [vmem:[%s1093_s20 + $0x2b0] sm:$0xff]  ;;  %v1640_v23 = vld [vmem:[%s1093_s20 + $0x2d8] sm:$0xff]  ;;  %v1650_v31 = vld [vmem:[%s1093_s20 + $0x2e8] sm:$0xff] }
  0x66   : > { %v401_v4 = vsub.f32 %v369_v38, %v1250_v58  ;;  %811 = vst [vmem:[%s1174_s16 + $0x148] sm:$0xff] %v397_v11  ;;  %812 = vst [vmem:[%s1174_s16 + $0x150] sm:$0xff] %v398_v32  ;;  %v402_v59 = vsub.f32 %v370_v55, %v1256_v60  ;;  %v341_v6 = vsub.f32 28.0, %v1578_v41  ;;  %v342_v54 = vsub.f32 28.0, %v1581_v45  ;;  %v1940_v39 = vld [vmem:[#allocation27_spill] sm:$0xff]  ;;  %v1942_v55 = vld [vmem:[#allocation28_spill] sm:$0xff] }
  0x67   : > { %813 = vst [vmem:[%s1174_s16 + $0x158] sm:$0xff] %v399_v53  ;;  %v343_v58 = vsub.f32 28.0, %v1584_v1  ;;  %814 = vst [vmem:[%s1174_s16 + $0x160] sm:$0xff] %v400_v12  ;;  %v403_v14 = vsub.f32 %v371_v40, %v1276_v15  ;;  %v372_v37 = vmul.f32 %v340_v44, %v1279_v21  ;;  %v344_v60 = vsub.f32 28.0, %v1591_v17  ;;  %v1626_v15 = vld [vmem:[%s1093_s20 + $0x2c0] sm:$0xff] }
  0x68   : > { %815 = vst [vmem:[%s1174_s16 + $0x168] sm:$0xff] %v401_v4  ;;  %v345_v16 = vsub.f32 28.0, %v1594_v8  ;;  %816 = vst [vmem:[%s1174_s16 + $0x170] sm:$0xff] %v402_v59  ;;  %v373_v18 = vmul.f32 %v341_v6, %v1288_v28  ;;  %v374_v27 = vmul.f32 %v342_v54, %v1308_v49  ;;  %v346_v26 = vsub.f32 28.0, %v1602_v46  ;;  %v1634_v49 = vld [vmem:[%s1093_s20 + $0x2c8] sm:$0xff]  ;;  %v1943_v4 = vld [vmem:[#allocation31_spill] sm:$0xff] }
  0x69   : > { %v375_v20 = vmul.f32 %v343_v58, %v1314_v51  ;;  %817 = vst [vmem:[%s1174_s16 + $0x178] sm:$0xff] %v403_v14  ;;  %v404_v21 = vsub.f32 %v372_v37, %v1285_v24  ;;  %v376_v52 = vmul.f32 %v344_v60, %v1323_v63  ;;  %v347_v28 = vsub.f32 28.0, %v1612_v25  ;;  %v1637_v51 = vld [vmem:[%s1093_s20 + $0x2d0] sm:$0xff]  ;;  %v1944_v6 = vld [vmem:[#allocation33_spill] sm:$0xff] }
  0x6a   : > { %v377_v34 = vmul.f32 %v345_v16, %v1343_v62  ;;  %v405_v33 = vsub.f32 %v373_v18, %v1291_v29  ;;  %v406_v24 = vsub.f32 %v374_v27, %v1311_v50  ;;  %v378_v62 = vmul.f32 %v346_v26, %v1349_v61  ;;  %v1945_v58 = vld [vmem:[#allocation35_spill] sm:$0xff]  ;;  %v1947_v18 = vld [vmem:[#allocation32_spill] sm:$0xff] }
  0x6b   : > { %v407_v63 = vsub.f32 %v375_v20, %v1320_v57  ;;  %818 = vst [vmem:[%s1174_s16 + $0x180] sm:$0xff] %v404_v21  ;;  %v408_v2 = vsub.f32 %v376_v52, %v1326_v3  ;;  %v379_v29 = vmul.f32 %v347_v28, %v1358_v43  ;;  %v348_v50 = vsub.f32 28.0, %v1626_v15  ;;  %v1658_v57 = vld [vmem:[%s1093_s20 + $0x2f0] sm:$0xff]  ;;  %v1948_v20 = vld [vmem:[#allocation41_spill] sm:$0xff]  ;;  %v1950_v28 = vld [vmem:[#allocation34_spill] sm:$0xff] }
  0x6c   : > { %v409_v38 = vsub.f32 %v377_v34, %v1346_v7  ;;  %1939 = vst [vmem:[#allocation57_spill] sm:$0xff] %v1658_v57  ;;  %819 = vst [vmem:[%s1174_s16 + $0x188] sm:$0xff] %v405_v33  ;;  %v410_v11 = vsub.f32 %v378_v62, %v1940_v39  ;;  %v349_v32 = vsub.f32 28.0, %v1634_v49  ;;  %v350_v53 = vsub.f32 28.0, %v1637_v51  ;;  %v1668_v7 = vld [vmem:[%s1093_s20 + $0x2f8] sm:$0xff]  ;;  %v1946_v37 = vld [vmem:[#allocation39_spill] sm:$0xff] }
  0x6d   : > { %820 = vst [vmem:[%s1174_s16 + $0x190] sm:$0xff] %v406_v24  ;;  %821 = vst [vmem:[%s1174_s16 + $0x198] sm:$0xff] %v407_v63  ;;  %v351_v3 = vsub.f32 28.0, %v1640_v23  ;;  %v411_v12 = vsub.f32 %v379_v29, %v1942_v55  ;;  %v380_v40 = vmul.f32 %v348_v50, %v1943_v4  ;;  %v352_v44 = vsub.f32 28.0, %v1647_v35  ;;  %v1949_v21 = vld [vmem:[#allocation43_spill] sm:$0xff]  ;;  %v1951_v24 = vld [vmem:[#allocation36_spill] sm:$0xff] }
  0x6e   : > { %1941 = vst [vmem:[#allocation27_spill] sm:$0xff] %v1668_v7  ;;  %822 = vst [vmem:[%s1174_s16 + $0x1a0] sm:$0xff] %v408_v2  ;;  %v353_v59 = vsub.f32 28.0, %v1650_v31  ;;  %v381_v54 = vmul.f32 %v349_v32, %v1944_v6  ;;  %v382_v14 = vmul.f32 %v350_v53, %v1945_v58  ;;  %v354_v16 = vsub.f32 28.0, %v1658_v57  ;;  %v1952_v62 = vld [vmem:[#allocation40_spill] sm:$0xff]  ;;  %v1954_v50 = vld [vmem:[#allocation42_spill] sm:$0xff] }
  0x6f   : > { %823 = vst [vmem:[%s1174_s16 + $0x1a8] sm:$0xff] %v409_v38  ;;  %824 = vst [vmem:[%s1174_s16 + $0x1b0] sm:$0xff] %v410_v11  ;;  %v383_v60 = vmul.f32 %v351_v3, %v1946_v37  ;;  %v412_v27 = vsub.f32 %v380_v40, %v1947_v18  ;;  %v384_v26 = vmul.f32 %v352_v44, %v1948_v20  ;;  %v355_v34 = vsub.f32 28.0, %v1668_v7  ;;  %v1953_v38 = vld [vmem:[#allocation47_spill] sm:$0xff]  ;;  %v1955_v32 = vld [vmem:[#allocation44_spill] sm:$0xff] }
  0x70   : > { %825 = vst [vmem:[%s1174_s16 + $0x1b8] sm:$0xff] %v411_v12  ;;  %v385_v52 = vmul.f32 %v353_v59, %v1949_v21  ;;  %v413_v33 = vsub.f32 %v381_v54, %v1950_v28  ;;  %v414_v63 = vsub.f32 %v382_v14, %v1951_v24  ;;  %v386_v29 = vmul.f32 %v354_v16, %v1953_v38  ;;  %v1956_v3 = vld [vmem:[#allocation49_spill] sm:$0xff]  ;;  %v1957_v40 = vld [vmem:[#allocation51_spill] sm:$0xff]  ;;  %v1958_v59 = vld [vmem:[#allocation48_spill] sm:$0xff] }
  0x71   : > { %v415_v2 = vsub.f32 %v383_v60, %v1952_v62  ;;  %826 = vst [vmem:[%s1174_s16 + $0x1c0] sm:$0xff] %v412_v27  ;;  %v416_v11 = vsub.f32 %v384_v26, %v1954_v50  ;;  %v387_v12 = vmul.f32 %v355_v34, %v1956_v3  ;;  %v452_v44 = vmul.f32 2.6666667, %v1957_v40  ;;  %v1959_v14 = vld [vmem:[#allocation52_spill] sm:$0xff]  ;;  %v1960_v16 = vld [vmem:[#allocation55_spill] sm:$0xff]  ;;  %v1963_v3 = vld [vmem:[#allocation13_spill] sm:$0xff] }
  0x72   : > { %v417_v53 = vsub.f32 %v385_v52, %v1955_v32  ;;  %827 = vst [vmem:[%s1174_s16 + $0x1c8] sm:$0xff] %v413_v33  ;;  %828 = vst [vmem:[%s1174_s16 + $0x1d0] sm:$0xff] %v414_v63  ;;  %v418_v54 = vsub.f32 %v386_v29, %v1958_v59  ;;  %v453_v60 = vmul.f32 2.6666667, %v1959_v14  ;;  %v454_v27 = vmul.f32 2.6666667, %v1960_v16 }
  0x73   : > { %829 = vst [vmem:[%s1174_s16 + $0x1d8] sm:$0xff] %v415_v2  ;;  %v1961_v7 = vld [vmem:[#allocation56_spill] sm:$0xff]  ;;  %830 = vst [vmem:[%s1174_s16 + $0x1e0] sm:$0xff] %v416_v11  ;;  %v1962_v52 = vld [vmem:[#allocation50_spill] sm:$0xff]  ;;  %v484_v33 = vsub.f32 %v1963_v3, %v452_v44  ;;  %v456_v63 = vmul.f32 2.6666667, %v1488_v42 }
  0x74   : > { %v455_v26 = vmul.f32 2.6666667, %v1961_v7  ;;  %831 = vst [vmem:[%s1174_s16 + $0x1e8] sm:$0xff] %v417_v53  ;;  %v419_v34 = vsub.f32 %v387_v12, %v1962_v52  ;;  %v457_v2 = vmul.f32 2.6666667, %v1495_v47  ;;  %832 = vst [vmem:[%s1174_s16 + $0x1f0] sm:$0xff] %v418_v54 }
  0x75   : > { %v1964_v29 = vld [vmem:[#allocation14_spill] sm:$0xff]  ;;  %v1965_v14 = vld [vmem:[#allocation15_spill] sm:$0xff]  ;;  %v1966_v57 = vld [vmem:[#allocation16_spill] sm:$0xff]  ;;  %v458_v11 = vmul.f32 2.6666667, %v1498_v48  ;;  %834 = vst [vmem:[%s1174_s16 + $0x200] sm:$0xff] %v484_v33 }
  0x76   : > { %v485_v40 = vsub.f32 %v1964_v29, %v453_v60  ;;  %v486_v16 = vsub.f32 %v1965_v14, %v454_v27  ;;  %v487_v7 = vsub.f32 %v1966_v57, %v455_v26  ;;  %833 = vst [vmem:[%s1174_s16 + $0x1f8] sm:$0xff] %v419_v34  ;;  %v1967_v53 = vld [vmem:[#allocation17_spill] sm:$0xff]  ;;  %v1968_v12 = vld [vmem:[#allocation18_spill] sm:$0xff]  ;;  %v459_v42 = vmul.f32 2.6666667, %v1506_v56  ;;  %v1969_v54 = vld [vmem:[#allocation19_spill] sm:$0xff] }
  0x77   : > { %v488_v3 = vsub.f32 %v1967_v53, %v456_v63  ;;  %v489_v44 = vsub.f32 %v1968_v12, %v457_v2  ;;  %v460_v47 = vmul.f32 2.6666667, %v1514_v0  ;;  %v490_v57 = vsub.f32 %v1969_v54, %v458_v11  ;;  %v1970_v26 = vld [vmem:[#allocation20_spill] sm:$0xff]  ;;  %v1971_v34 = vld [vmem:[#allocation21_spill] sm:$0xff]  ;;  %v1972_v2 = vld [vmem:[#allocation22_spill] sm:$0xff] }
  0x78   : > { %835 = vst [vmem:[%s1174_s16 + $0x208] sm:$0xff] %v485_v40  ;;  %836 = vst [vmem:[%s1174_s16 + $0x210] sm:$0xff] %v486_v16  ;;  %v461_v48 = vmul.f32 2.6666667, %v1522_v5  ;;  %v462_v60 = vmul.f32 2.6666667, %v1525_v9  ;;  %v491_v56 = vsub.f32 %v1970_v26, %v459_v42 }
  0x79   : > { %837 = vst [vmem:[%s1174_s16 + $0x218] sm:$0xff] %v487_v7  ;;  %v463_v27 = vmul.f32 2.6666667, %v1528_v13  ;;  %838 = vst [vmem:[%s1174_s16 + $0x220] sm:$0xff] %v488_v3  ;;  %v492_v0 = vsub.f32 %v1971_v34, %v460_v47  ;;  %v464_v33 = vmul.f32 2.6666667, %v1535_v19 }
  0x7a   : > { %839 = vst [vmem:[%s1174_s16 + $0x228] sm:$0xff] %v489_v44  ;;  %v465_v63 = vmul.f32 2.6666667, %v1538_v36  ;;  %840 = vst [vmem:[%s1174_s16 + $0x230] sm:$0xff] %v490_v57  ;;  %v493_v5 = vsub.f32 %v1972_v2, %v461_v48  ;;  %v1973_v29 = vld [vmem:[#allocation23_spill] sm:$0xff]  ;;  %v1974_v40 = vld [vmem:[#allocation24_spill] sm:$0xff] }
  0x7b   : > { %v494_v9 = vsub.f32 %v1973_v29, %v462_v60  ;;  %v495_v13 = vsub.f32 %v1974_v40, %v463_v27  ;;  %v466_v14 = vmul.f32 2.6666667, %v1546_v10  ;;  %841 = vst [vmem:[%s1174_s16 + $0x238] sm:$0xff] %v491_v56  ;;  %842 = vst [vmem:[%s1174_s16 + $0x240] sm:$0xff] %v492_v0  ;;  %v1975_v16 = vld [vmem:[#allocation25_spill] sm:$0xff]  ;;  %v1976_v11 = vld [vmem:[#allocation26_spill] sm:$0xff]  ;;  %v442_v56 = vmul.f32 %v1940_v39, %v1349_v61 }
  0x7c   : > { %v496_v7 = vsub.f32 %v1975_v16, %v464_v33  ;;  %v497_v53 = vsub.f32 %v1976_v11, %v465_v63  ;;  %v467_v19 = vmul.f32 2.6666667, %v1556_v22  ;;  %v468_v36 = vmul.f32 2.6666667, %v1570_v30  ;;  %843 = vst [vmem:[%s1174_s16 + $0x248] sm:$0xff] %v493_v5  ;;  %v1977_v3 = vld [vmem:[#allocation29_spill] sm:$0xff] }
  0x7d   : > { %844 = vst [vmem:[%s1174_s16 + $0x250] sm:$0xff] %v494_v9  ;;  %845 = vst [vmem:[%s1174_s16 + $0x258] sm:$0xff] %v495_v13  ;;  %v498_v12 = vsub.f32 %v1977_v3, %v466_v14  ;;  %v469_v10 = vmul.f32 2.6666667, %v1578_v41  ;;  %v470_v44 = vmul.f32 2.6666667, %v1581_v45  ;;  %v443_v63 = vmul.f32 %v1942_v55, %v1358_v43 }
  0x7e   : > { %v471_v42 = vmul.f32 2.6666667, %v1584_v1  ;;  %846 = vst [vmem:[%s1174_s16 + $0x260] sm:$0xff] %v496_v7  ;;  %847 = vst [vmem:[%s1174_s16 + $0x268] sm:$0xff] %v497_v53  ;;  %v1978_v47 = vld [vmem:[#allocation30_spill] sm:$0xff]  ;;  %v1979_v54 = vld [vmem:[#allocation37_spill] sm:$0xff]  ;;  %v444_v61 = vmul.f32 %v1947_v18, %v1943_v4  ;;  %v445_v5 = vmul.f32 %v1950_v28, %v1944_v6  ;;  %v446_v55 = vmul.f32 %v1951_v24, %v1945_v58 }
  0x7f   : > { %v499_v22 = vsub.f32 %v1978_v47, %v467_v19  ;;  %v500_v30 = vsub.f32 %v1979_v54, %v468_v36  ;;  %v472_v57 = vmul.f32 2.6666667, %v1591_v17  ;;  %v473_v48 = vmul.f32 2.6666667, %v1594_v8  ;;  %848 = vst [vmem:[%s1174_s16 + $0x270] sm:$0xff] %v498_v12  ;;  %v1980_v60 = vld [vmem:[#allocation38_spill] sm:$0xff] }
  0x80   : > { %v501_v41 = vsub.f32 %v1980_v60, %v469_v10  ;;  %v1981_v27 = vld [vmem:[#allocation45_spill] sm:$0xff]  ;;  %v1982_v26 = vld [vmem:[#allocation46_spill] sm:$0xff]  ;;  %v474_v8 = vmul.f32 2.6666667, %v1602_v46  ;;  %v475_v2 = vmul.f32 2.6666667, %v1612_v25  ;;  %v450_v24 = vmul.f32 %v1958_v59, %v1953_v38 }
  0x81   : > { %v502_v45 = vsub.f32 %v1981_v27, %v470_v44  ;;  %v503_v1 = vsub.f32 %v1982_v26, %v471_v42  ;;  %849 = vst [vmem:[%s1174_s16 + $0x278] sm:$0xff] %v499_v22  ;;  %850 = vst [vmem:[%s1174_s16 + $0x280] sm:$0xff] %v500_v30  ;;  %v1983_v34 = vld [vmem:[#allocation53_spill] sm:$0xff]  ;;  %v1984_v33 = vld [vmem:[#allocation54_spill] sm:$0xff]  ;;  %v476_v39 = vmul.f32 2.6666667, %v1626_v15  ;;  %v447_v15 = vmul.f32 %v1952_v62, %v1946_v37 }
  0x82   : > { %v504_v0 = vsub.f32 %v1983_v34, %v472_v57  ;;  %v505_v17 = vsub.f32 %v1984_v33, %v473_v48  ;;  %851 = vst [vmem:[%s1174_s16 + $0x288] sm:$0xff] %v501_v41  ;;  %v506_v46 = vsub.f32 %v442_v56, %v474_v8  ;;  %v477_v43 = vmul.f32 2.6666667, %v1634_v49  ;;  %v1985_v62 = vld [vmem:[#allocation57_spill] sm:$0xff]  ;;  %v1987_v40 = vld [vmem:[#allocation27_spill] sm:$0xff] }
  0x83   : > { %852 = vst [vmem:[%s1174_s16 + $0x290] sm:$0xff] %v502_v45  ;;  %853 = vst [vmem:[%s1174_s16 + $0x298] sm:$0xff] %v503_v1  ;;  %v478_v25 = vmul.f32 2.6666667, %v1637_v51  ;;  %v507_v29 = vsub.f32 %v443_v63, %v475_v2  ;;  %v508_v4 = vsub.f32 %v444_v61, %v476_v39  ;;  %v479_v6 = vmul.f32 2.6666667, %v1640_v23 }
  0x84   : > { %854 = vst [vmem:[%s1174_s16 + $0x2a0] sm:$0xff] %v504_v0  ;;  %855 = vst [vmem:[%s1174_s16 + $0x2a8] sm:$0xff] %v505_v17  ;;  %v509_v18 = vsub.f32 %v445_v5, %v477_v43  ;;  %v448_v49 = vmul.f32 %v1954_v50, %v1948_v20  ;;  %v480_v58 = vmul.f32 2.6666667, %v1647_v35  ;;  %v449_v37 = vmul.f32 %v1955_v32, %v1949_v21  ;;  %v1986_v50 = vld [vmem:[#allocation49_spill] sm:$0xff] }
  0x85   : > { %856 = vst [vmem:[%s1174_s16 + $0x2b0] sm:$0xff] %v506_v46  ;;  %v510_v28 = vsub.f32 %v446_v55, %v478_v25  ;;  %857 = vst [vmem:[%s1174_s16 + $0x2b8] sm:$0xff] %v507_v29  ;;  %v511_v51 = vsub.f32 %v447_v15, %v479_v6  ;;  %v481_v23 = vmul.f32 2.6666667, %v1650_v31  ;;  %v482_v35 = vmul.f32 2.6666667, %v1985_v62 }
  0x86   : > { %858 = vst [vmem:[%s1174_s16 + $0x2c0] sm:$0xff] %v508_v4  ;;  %859 = vst [vmem:[%s1174_s16 + $0x2c8] sm:$0xff] %v509_v18  ;;  %v512_v20 = vsub.f32 %v448_v49, %v480_v58  ;;  %v451_v9 = vmul.f32 %v1962_v52, %v1986_v50  ;;  %v483_v13 = vmul.f32 2.6666667, %v1987_v40 }
  0x87   : > { %860 = vst [vmem:[%s1174_s16 + $0x2d0] sm:$0xff] %v510_v28  ;;  %861 = vst [vmem:[%s1174_s16 + $0x2d8] sm:$0xff] %v511_v51  ;;  %v513_v14 = vsub.f32 %v449_v37, %v481_v23  ;;  %v514_v21 = vsub.f32 %v450_v24, %v482_v35 }
  0x88   : > { %862 = vst [vmem:[%s1174_s16 + $0x2e0] sm:$0xff] %v512_v20  ;;  %v515_v32 = vsub.f32 %v451_v9, %v483_v13 }
  0x89   : > { %863 = vst [vmem:[%s1174_s16 + $0x2e8] sm:$0xff] %v513_v14  ;;  %864 = vst [vmem:[%s1174_s16 + $0x2f0] sm:$0xff] %v514_v21 }
  0x8a   : > { %865 = vst [vmem:[%s1174_s16 + $0x2f8] sm:$0xff] %v515_v32 }
  0x8b   : > { %s871_s25 = sshll.u32 %s1025_s10, 12  ;;  %s644_s26 = sshll.u32 %s1174_s16, 4  ;;  %s645_s26 = int_to_ptr.vmem [resolvable:$true] %s644_s26 }
  0x8c   : > { %s627_s29 = scalar_lea.hbm %s1848_s1, %s871_s25  ;;  %s987_s30 = smov 4096  }
  0x8d   : > { %883 = sst [smem:[#allocation9]] (%p1052_p9), %s987_s30  ;;  %s988_s2 = smov 8192  }
  0x8e   : > { %884 = sst [smem:[#allocation9 + $0x1]] (%p1052_p9), %s988_s2  ;;  %s989_s3 = smov 32  }
  0x8f   : > { %885 = sst [smem:[#allocation9 + $0x2]] (%p1052_p9), %s989_s3  ;;  %s990_s4 = smov 128  }
  0x90   : > { %886 = sst [smem:[#allocation9 + $0x3]] (%p1052_p9), %s990_s4  ;;  %s991_s10 = smov 8  }
  0x91   : > { %887 = sst [smem:[#allocation9 + $0x4]] (%p1052_p9), %s990_s4  ;;  %s992_s5 = smov [#allocation8]  }
  0x92   : > { %888 = sst [smem:[#allocation9 + $0x5]] (%p1052_p9), %s991_s10  ;;  %s993_s11 = smov 0  }
  0x93   : > { %889 = dma.general (%p1052_p9), %s645_s26, 12288, %s627_s29, %s615_s17, %s992_s5, [#allocation9], %s993_s11, 0  }
  0x94 PF: > { %s672_s13 = sand.u32 1, %s967_s6   ;;  %p892_p1 = pnand %p732_p11, %p1056_p10 }
  0x95   : > { %s673_s14 = scalar_lea.sflag [#allocation4], %s672_s13 }
  0x96   : > { %962 = dma.done.wait (!%p892_p1), %s673_s14, 12288  }
  0x97   : > { %964 = vsyncadd (!%p892_p1), %s673_s14, 4294955008  ;;  %p14_p2 = scmp.ge.s32.totalorder %s1029_s12, 4   ;;  %s1988_s6 = smov %s971_s7 }
  0x98   : > { %s1989_s7 = smov %s975_s8  ;;  %s1990_s8 = smov %s1041_s15 }
  0x99   : > { %s1991_s9 = smov %s1029_s12  ;;  %16 = sbr.rel (!%p14_p2) target bundleno = 5 (0x5), region = 83 }
  0xa0   :  { %678 = vsyncpa [#allocation3], 1 }
  0xa1   :  { %680 = vsyncpa [#allocation3 + $0x1], 1 }
  0xa2   :  { %681 = vsyncpa [#allocation4], 1 }
  0xa3   :  { %683 = vsyncpa [#allocation4 + $0x1], 1 }

</bundles_post_ra>
